<compile_context>
chip_gen: v5e
topology: v5e:2x2
jax: 0.10.0
libtpu: 0.0.40
codegen_flags: <defaults>
</compile_context>

<pallas_src>
import functools

import jax
import jax.numpy as jnp
import numpy as np
from jax.experimental import pallas as pl
from jax.experimental.pallas import tpu as pltpu

LN_EPS = 1e-5   # torch.nn.LayerNorm default
LANE = 128
PACK = 16       # bf16 packed sublane tile height


def _round_up(x, m):
    return ((x + m - 1) // m) * m


def _choose_tiling(B):
    """Pick a batch tile TM (multiple of 16, <=512) and the padded batch size.

    Ensures >= 2 grid steps when B allows it (so v7x's two TensorCores both
    get work) while keeping row-padding waste small."""
    B16 = _round_up(max(B, 1), PACK)
    cap = 512
    n_tiles = max(2, -(-B16 // cap))
    tm = min(cap, _round_up(-(-B16 // n_tiles), PACK))
    b_pad = _round_up(B16, tm)
    return tm, b_pad


def _fused_mlp_kernel(n_layers, n_hidden, n_pad, x_ref, *refs):
    """Whole FC stack on one batch tile (activation stays in VMEM).

    refs = (w0, b0, g0, beta0, w1, b1, g1, beta1, ..., o_ref)
      x_ref        : (TM, K0_pad)     bf16
      w_l          : (K_l_pad, N_pad) bf16   (layer 0 has a different K)
      b/g/beta     : (1, N_pad)       f32    (zero past n_hidden)
      o_ref        : (TM, N_pad)      f32
    """
    o_ref = refs[-1]
    inv_n = jnp.float32(1.0 / n_hidden)

    # Column mask for the LayerNorm variance pass (only needed if the feature
    # dim was lane-padded).  Built once, reused for every layer.
    if n_pad > n_hidden:
        col = jax.lax.broadcasted_iota(jnp.int32, (1, n_pad), 1)
        col_mask = (col < n_hidden).astype(jnp.float32)
    else:
        col_mask = None

    h = x_ref[...]                                       # bf16 activation tile
    for l in range(n_layers):
        w_ref, b_ref, g_ref, beta_ref = refs[4 * l: 4 * l + 4]
        # Linear: bf16 x bf16 on the MXU, f32 accumulation, then bias.
        acc = jnp.dot(h, w_ref[...], preferred_element_type=jnp.float32)
        acc = acc + b_ref[...]
        # ReLU
        acc = jnp.maximum(acc, 0.0)
        # LayerNorm over the real n_hidden features, two-pass variance.
        # Padded columns of `acc` are exactly zero by construction (zero
        # padded W columns and bias), so the unmasked row sum / n_hidden is
        # the true mean.  The centered padded columns are masked back to zero
        # before the sum-of-squares pass so the variance is exact too.
        mean = jnp.sum(acc, axis=-1, keepdims=True) * inv_n
        centered = acc - mean
        if col_mask is not None:
            centered = centered * col_mask
        var = jnp.sum(centered * centered, axis=-1, keepdims=True) * inv_n
        out = centered * jax.lax.rsqrt(var + LN_EPS) * g_ref[...] + beta_ref[...]
        # Dropout: identity (eval mode).
        if l == n_layers - 1:
            o_ref[...] = out.astype(o_ref.dtype)
        else:
            h = out.astype(jnp.bfloat16)                 # handoff to next matmul


def fused_fc_forward(x, padded_params, n_hidden):
    """x: (B, K0) f32 (un-padded).  padded_params: [(w_bf16, b, gamma, beta)].
    Returns (B, n_hidden) f32."""
    B, K0 = x.shape
    K0_pad = padded_params[0][0].shape[0]
    N_pad = padded_params[-1][0].shape[1]
    n_layers = len(padded_params)

    TM, B_pad = _choose_tiling(B)

    # Single fused pad (rows to the tile multiple, features to lane width),
    # cast to bf16 for the MXU.
    x_p = jnp.pad(x.astype(jnp.bfloat16), ((0, B_pad - B), (0, K0_pad - K0)))

    # Parameters are VMEM-resident across the whole batch grid (constant
    # index_map), so give them a single buffer instead of the default two.
    resident = pl.Buffered(buffer_count=1)

    in_specs = [pl.BlockSpec((TM, K0_pad), lambda i: (i, 0))]
    flat_params = []
    param_bytes = 0
    for (w, b, g, be) in padded_params:
        for arr in (w, b, g, be):
            in_specs.append(pl.BlockSpec(arr.shape, lambda i: (0, 0),
                                         pipeline_mode=resident))
            flat_params.append(arr)
            param_bytes += int(arr.size) * arr.dtype.itemsize
    out_specs = pl.BlockSpec((TM, N_pad), lambda i: (i, 0))

    # Explicit VMEM budget: single-buffered resident params + double-buffered
    # activation / output tiles + slack for the epilogue temporaries.
    act_bytes = 2 * TM * K0_pad * 2            # bf16 input tile, double-buffered
    out_bytes = 2 * TM * N_pad * 4             # f32 output tile, double-buffered
    slack = 8 * TM * N_pad * 4 + (4 << 20)     # epilogue temps + headroom
    needed = param_bytes + act_bytes + out_bytes + slack
    try:
        phys = int(getattr(pltpu.get_tpu_info(), "vmem_capacity_bytes", 64 << 20))
    except Exception:                          # no chip info -> v7x-safe fallback
        phys = 64 << 20
    ceiling = int(phys * 0.85)                 # ~100 MiB v5e/v6e, ~56 MiB v7x
    vmem_limit = int(min(max(needed, 32 << 20), ceiling))
    # TODO(synk): if param_bytes alone exceeds the ceiling (deep/wide stacks on
    # v7x's 64 MiB VMEM), stream weights per layer (second grid axis over
    # layers / pltpu.emit_pipeline over a stacked (L, K_pad, N_pad) weight
    # array) instead of keeping every layer resident.

    flops = sum(2 * B_pad * w.shape[0] * w.shape[1]
                for (w, _, _, _) in padded_params)
    bytes_accessed = x_p.size * 2 + B_pad * N_pad * 4 + param_bytes
    cost = pl.CostEstimate(flops=flops,
                           transcendentals=B_pad * n_layers,   # rsqrt / row / layer
                           bytes_accessed=bytes_accessed)

    kernel = functools.partial(_fused_mlp_kernel, n_layers, n_hidden, N_pad)
    out_p = pl.pallas_call(
        kernel,
        out_shape=jax.ShapeDtypeStruct((B_pad, N_pad), jnp.float32),
        grid_spec=pltpu.PrefetchScalarGridSpec(
            num_scalar_prefetch=0,
            grid=(B_pad // TM,),
            in_specs=in_specs,
            out_specs=out_specs,
        ),
        compiler_params=pltpu.CompilerParams(
            dimension_semantics=("parallel",),
            vmem_limit_bytes=vmem_limit),
        cost_estimate=cost,
    )(x_p, *flat_params)

    return out_p[:B, :n_hidden]


class FCLayersPallas:
    """JAX/Pallas port of FCLayers (eval mode). Deterministic init."""

    def __init__(self, n_in, n_layers=1, n_hidden=128, dropout_rate=0.1,
                 batch_properties=None, layer_norm=True, key=None):
        assert layer_norm, "only the layer_norm=True path is implemented"
        self.batch_dims = (
            [] if batch_properties is None
            else [len(batch_properties[k]["values"]) for k in batch_properties.keys()]
        )
        k0 = n_in + int(np.sum(self.batch_dims)) if self.batch_dims else n_in
        layers_dim = [k0] + n_layers * [n_hidden]
        self.n_layers = n_layers
        self.n_hidden = n_hidden
        # TODO(synk): dropout_rate stored but dropout is identity (eval mode);
        # training-mode dropout would need pltpu.prng_seed/prng_random_bits.
        self.dropout_rate = dropout_rate

        if key is None:
            key = jax.random.PRNGKey(0)

        n_pad = _round_up(n_hidden, LANE)
        # Invariant the kernel relies on: the padded regions of W columns,
        # bias, gamma and beta are exactly zero.  Keep this when importing
        # external (e.g. PyTorch) weights.
        self.params_ref = []      # un-padded f32 (pure-JAX reference)
        self.params_padded = []   # lane-padded, weights bf16 (kernel inputs)
        for n in range(n_layers):
            key, kw, kb = jax.random.split(key, 3)
            fan_in = layers_dim[n]
            bound = 1.0 / np.sqrt(fan_in)
            # stored as (in, out) == PyTorch weight.T
            w = jax.random.uniform(kw, (layers_dim[n], layers_dim[n + 1]),
                                   jnp.float32, -bound, bound)
            b = jax.random.uniform(kb, (1, layers_dim[n + 1]),
                                   jnp.float32, -bound, bound)
            gamma = jnp.ones((1, layers_dim[n + 1]), jnp.float32)
            beta = jnp.zeros((1, layers_dim[n + 1]), jnp.float32)
            self.params_ref.append((w, b, gamma, beta))

            k_pad = _round_up(layers_dim[n], LANE)
            w_p = jnp.zeros((k_pad, n_pad), jnp.float32).at[:layers_dim[n], :n_hidden].set(w)
            b_p = jnp.zeros((1, n_pad), jnp.float32).at[:, :n_hidden].set(b)
            g_p = jnp.zeros((1, n_pad), jnp.float32).at[:, :n_hidden].set(gamma)
            be_p = jnp.zeros((1, n_pad), jnp.float32).at[:, :n_hidden].set(beta)
            self.params_padded.append((w_p.astype(jnp.bfloat16), b_p, g_p, be_p))

        # Whole forward (concat + pad + pallas_call + slice) under one jit so
        # the host-side glue doesn't dispatch as separate HBM-roundtrip ops.
        self._fwd_plain = jax.jit(
            lambda xx: fused_fc_forward(xx, self.params_padded, self.n_hidden))
        self._fwd_batched = jax.jit(
            lambda xx, bv, bm: fused_fc_forward(
                self._concat_batch(xx, bv, bm),
                self.params_padded, self.n_hidden))

    def _concat_batch(self, x, batch_vals, batch_mask):
        if batch_vals is None or batch_mask is None:
            return x
        batch_vals = jnp.where(batch_vals < 0, 0, batch_vals)
        pieces = [x]
        for n, dim in enumerate(self.batch_dims):
            b = jax.nn.one_hot(batch_vals[:, n], dim, dtype=x.dtype)
            b = b * batch_mask[:, n:n + 1].astype(x.dtype)
            pieces.append(b)
        return jnp.concatenate(pieces, axis=-1)

    def __call__(self, x, batch_vals=None, batch_mask=None):
        if batch_vals is None or batch_mask is None:
            return self._fwd_plain(x)
        return self._fwd_batched(x, batch_vals, batch_mask)

    def reference(self, x, batch_vals=None, batch_mask=None):
        """Pure-JAX forward matching the kernel's bf16 matmul-input rounding."""
        x = self._concat_batch(x, batch_vals, batch_mask)
        h = x.astype(jnp.bfloat16).astype(jnp.float32)
        for l, (w, b, g, be) in enumerate(self.params_ref):
            w16 = w.astype(jnp.bfloat16).astype(jnp.float32)
            h = h @ w16 + b
            h = jnp.maximum(h, 0.0)
            mean = jnp.mean(h, axis=-1, keepdims=True)
            var = jnp.mean((h - mean) ** 2, axis=-1, keepdims=True)
            h = (h - mean) * jax.lax.rsqrt(var + LN_EPS) * g + be
            if l < self.n_layers - 1:
                h = h.astype(jnp.bfloat16).astype(jnp.float32)
        return h


if __name__ == "__main__":
    key = jax.random.PRNGKey(0)
    k_x, k_bv, k_bm, k_params = jax.random.split(key, 4)

    batch = 8
    n_in = 32
    n_hidden = 32
    n_layers = 2
    batch_properties = {
        "donor": {"values": list(range(3))},
        "site": {"values": list(range(5))},
    }

    model = FCLayersPallas(
        n_in=n_in, n_layers=n_layers, n_hidden=n_hidden,
        dropout_rate=0.1, batch_properties=batch_properties,
        layer_norm=True, key=k_params,
    )

    x = jax.random.normal(k_x, (batch, n_in), jnp.float32)
    batch_vals = jax.random.randint(k_bv, (batch, 2), -1, 3)   # includes negatives
    batch_mask = (jax.random.uniform(k_bm, (batch, 2)) > 0.3).astype(jnp.float32)

    out = model(x, batch_vals, batch_mask)
    out = jax.block_until_ready(out)
    assert out.shape == (batch, n_hidden), out.shape
    assert bool(jnp.all(jnp.isfinite(out)))

    ref = model.reference(x, batch_vals, batch_mask)
    max_err = float(jnp.max(jnp.abs(out - ref)))
    assert max_err < 5e-3, f"kernel vs reference mismatch: {max_err}"

    print("KERNEL_OK")
</pallas_src>

<mosaic_0001>
module attributes {stable_mosaic.version = 11 : i64} {
  func.func @_fused_mlp_kernel(%arg0: i32, %arg1: memref<16x128xbf16, #tpu.memory_space<vmem>>, %arg2: memref<128x128xbf16, #tpu.memory_space<vmem>>, %arg3: memref<1x128xf32, #tpu.memory_space<vmem>>, %arg4: memref<1x128xf32, #tpu.memory_space<vmem>>, %arg5: memref<1x128xf32, #tpu.memory_space<vmem>>, %arg6: memref<128x128xbf16, #tpu.memory_space<vmem>>, %arg7: memref<1x128xf32, #tpu.memory_space<vmem>>, %arg8: memref<1x128xf32, #tpu.memory_space<vmem>>, %arg9: memref<1x128xf32, #tpu.memory_space<vmem>>, %arg10: memref<16x128xf32, #tpu.memory_space<vmem>>) attributes {dimension_semantics = [#tpu.dimension_semantics<parallel>], iteration_bounds = array<i64: 1>, scalar_prefetch = 0 : i64, scratch_operands = 0 : i64, tpu.core_type = #tpu.core_type<tc>, window_params = [{transform_indices = @transform_0, window_bounds = array<i64: 16, 128>}, {pipeline_mode = #tpu.pipeline_mode<synchronous>, transform_indices = @transform_1, window_bounds = array<i64: 128, 128>}, {pipeline_mode = #tpu.pipeline_mode<synchronous>, transform_indices = @transform_2, window_bounds = array<i64: 1, 128>}, {pipeline_mode = #tpu.pipeline_mode<synchronous>, transform_indices = @transform_3, window_bounds = array<i64: 1, 128>}, {pipeline_mode = #tpu.pipeline_mode<synchronous>, transform_indices = @transform_4, window_bounds = array<i64: 1, 128>}, {pipeline_mode = #tpu.pipeline_mode<synchronous>, transform_indices = @transform_5, window_bounds = array<i64: 128, 128>}, {pipeline_mode = #tpu.pipeline_mode<synchronous>, transform_indices = @transform_6, window_bounds = array<i64: 1, 128>}, {pipeline_mode = #tpu.pipeline_mode<synchronous>, transform_indices = @transform_7, window_bounds = array<i64: 1, 128>}, {pipeline_mode = #tpu.pipeline_mode<synchronous>, transform_indices = @transform_8, window_bounds = array<i64: 1, 128>}, {transform_indices = @transform_9, window_bounds = array<i64: 16, 128>}]} {
    %0 = tpu.iota {dimensions = array<i32: 1>} : vector<1x128xi32>
    %c32_i32 = arith.constant 32 : i32
    %1 = vector.broadcast %c32_i32 : i32 to vector<1x128xi32>
    %2 = arith.cmpi slt, %0, %1 : vector<1x128xi32>
    %3 = arith.extui %2 : vector<1x128xi1> to vector<1x128xi32>
    %4 = arith.sitofp %3 : vector<1x128xi32> to vector<1x128xf32>
    %c0 = arith.constant 0 : index
    %c0_0 = arith.constant 0 : index
    %5 = vector.load %arg1[%c0, %c0_0] : memref<16x128xbf16, #tpu.memory_space<vmem>>, vector<16x128xbf16>
    %c0_1 = arith.constant 0 : index
    %c0_2 = arith.constant 0 : index
    %6 = vector.load %arg2[%c0_1, %c0_2] : memref<128x128xbf16, #tpu.memory_space<vmem>>, vector<128x128xbf16>
    %cst = arith.constant dense<0.000000e+00> : vector<16x128xf32>
    %7 = tpu.matmul %5, %6, %cst {dimension_numbers = #tpu.dot_dimension_numbers<[1], [0], [0], [1], [0, 0, 1, 1], [], []>} : vector<16x128xbf16>, vector<128x128xbf16>, vector<16x128xf32> -> vector<16x128xf32>
    %c0_3 = arith.constant 0 : index
    %c0_4 = arith.constant 0 : index
    %8 = vector.load %arg3[%c0_3, %c0_4] : memref<1x128xf32, #tpu.memory_space<vmem>>, vector<1x128xf32>
    %9 = vector.broadcast %8 : vector<1x128xf32> to vector<16x128xf32>
    %10 = arith.addf %7, %9 : vector<16x128xf32>
    %cst_5 = arith.constant 0.000000e+00 : f32
    %11 = vector.broadcast %cst_5 : f32 to vector<16x128xf32>
    %12 = arith.maximumf %10, %11 : vector<16x128xf32>
    %cst_6 = arith.constant dense<0.000000e+00> : vector<16xf32>
    %13 = vector.multi_reduction <add>, %12, %cst_6 [1] : vector<16x128xf32> to vector<16xf32>
    %14 = vector.shape_cast %13 : vector<16xf32> to vector<16x1xf32>
    %cst_7 = arith.constant 3.125000e-02 : f32
    %15 = vector.broadcast %cst_7 : f32 to vector<16x1xf32>
    %16 = arith.mulf %14, %15 : vector<16x1xf32>
    %17 = vector.broadcast %16 : vector<16x1xf32> to vector<16x128xf32>
    %18 = arith.subf %12, %17 : vector<16x128xf32>
    %19 = vector.broadcast %4 : vector<1x128xf32> to vector<16x128xf32>
    %20 = arith.mulf %18, %19 : vector<16x128xf32>
    %21 = arith.mulf %20, %20 : vector<16x128xf32>
    %cst_8 = arith.constant dense<0.000000e+00> : vector<16xf32>
    %22 = vector.multi_reduction <add>, %21, %cst_8 [1] : vector<16x128xf32> to vector<16xf32>
    %23 = vector.shape_cast %22 : vector<16xf32> to vector<16x1xf32>
    %cst_9 = arith.constant 3.125000e-02 : f32
    %24 = vector.broadcast %cst_9 : f32 to vector<16x1xf32>
    %25 = arith.mulf %23, %24 : vector<16x1xf32>
    %cst_10 = arith.constant 9.99999974E-6 : f32
    %26 = vector.broadcast %cst_10 : f32 to vector<16x1xf32>
    %27 = arith.addf %25, %26 : vector<16x1xf32>
    %28 = math.rsqrt %27 : vector<16x1xf32>
    %29 = vector.broadcast %28 : vector<16x1xf32> to vector<16x128xf32>
    %30 = arith.mulf %20, %29 : vector<16x128xf32>
    %c0_11 = arith.constant 0 : index
    %c0_12 = arith.constant 0 : index
    %31 = vector.load %arg4[%c0_11, %c0_12] : memref<1x128xf32, #tpu.memory_space<vmem>>, vector<1x128xf32>
    %32 = vector.broadcast %31 : vector<1x128xf32> to vector<16x128xf32>
    %33 = arith.mulf %30, %32 : vector<16x128xf32>
    %c0_13 = arith.constant 0 : index
    %c0_14 = arith.constant 0 : index
    %34 = vector.load %arg5[%c0_13, %c0_14] : memref<1x128xf32, #tpu.memory_space<vmem>>, vector<1x128xf32>
    %35 = vector.broadcast %34 : vector<1x128xf32> to vector<16x128xf32>
    %36 = arith.addf %33, %35 : vector<16x128xf32>
    %37 = arith.truncf %36 : vector<16x128xf32> to vector<16x128xbf16>
    %c0_15 = arith.constant 0 : index
    %c0_16 = arith.constant 0 : index
    %38 = vector.load %arg6[%c0_15, %c0_16] : memref<128x128xbf16, #tpu.memory_space<vmem>>, vector<128x128xbf16>
    %cst_17 = arith.constant dense<0.000000e+00> : vector<16x128xf32>
    %39 = tpu.matmul %37, %38, %cst_17 {dimension_numbers = #tpu.dot_dimension_numbers<[1], [0], [0], [1], [0, 0, 1, 1], [], []>} : vector<16x128xbf16>, vector<128x128xbf16>, vector<16x128xf32> -> vector<16x128xf32>
    %c0_18 = arith.constant 0 : index
    %c0_19 = arith.constant 0 : index
    %40 = vector.load %arg7[%c0_18, %c0_19] : memref<1x128xf32, #tpu.memory_space<vmem>>, vector<1x128xf32>
    %41 = vector.broadcast %40 : vector<1x128xf32> to vector<16x128xf32>
    %42 = arith.addf %39, %41 : vector<16x128xf32>
    %cst_20 = arith.constant 0.000000e+00 : f32
    %43 = vector.broadcast %cst_20 : f32 to vector<16x128xf32>
    %44 = arith.maximumf %42, %43 : vector<16x128xf32>
    %cst_21 = arith.constant dense<0.000000e+00> : vector<16xf32>
    %45 = vector.multi_reduction <add>, %44, %cst_21 [1] : vector<16x128xf32> to vector<16xf32>
    %46 = vector.shape_cast %45 : vector<16xf32> to vector<16x1xf32>
    %cst_22 = arith.constant 3.125000e-02 : f32
    %47 = vector.broadcast %cst_22 : f32 to vector<16x1xf32>
    %48 = arith.mulf %46, %47 : vector<16x1xf32>
    %49 = vector.broadcast %48 : vector<16x1xf32> to vector<16x128xf32>
    %50 = arith.subf %44, %49 : vector<16x128xf32>
    %51 = vector.broadcast %4 : vector<1x128xf32> to vector<16x128xf32>
    %52 = arith.mulf %50, %51 : vector<16x128xf32>
    %53 = arith.mulf %52, %52 : vector<16x128xf32>
    %cst_23 = arith.constant dense<0.000000e+00> : vector<16xf32>
    %54 = vector.multi_reduction <add>, %53, %cst_23 [1] : vector<16x128xf32> to vector<16xf32>
    %55 = vector.shape_cast %54 : vector<16xf32> to vector<16x1xf32>
    %cst_24 = arith.constant 3.125000e-02 : f32
    %56 = vector.broadcast %cst_24 : f32 to vector<16x1xf32>
    %57 = arith.mulf %55, %56 : vector<16x1xf32>
    %cst_25 = arith.constant 9.99999974E-6 : f32
    %58 = vector.broadcast %cst_25 : f32 to vector<16x1xf32>
    %59 = arith.addf %57, %58 : vector<16x1xf32>
    %60 = math.rsqrt %59 : vector<16x1xf32>
    %61 = vector.broadcast %60 : vector<16x1xf32> to vector<16x128xf32>
    %62 = arith.mulf %52, %61 : vector<16x128xf32>
    %c0_26 = arith.constant 0 : index
    %c0_27 = arith.constant 0 : index
    %63 = vector.load %arg8[%c0_26, %c0_27] : memref<1x128xf32, #tpu.memory_space<vmem>>, vector<1x128xf32>
    %64 = vector.broadcast %63 : vector<1x128xf32> to vector<16x128xf32>
    %65 = arith.mulf %62, %64 : vector<16x128xf32>
    %c0_28 = arith.constant 0 : index
    %c0_29 = arith.constant 0 : index
    %66 = vector.load %arg9[%c0_28, %c0_29] : memref<1x128xf32, #tpu.memory_space<vmem>>, vector<1x128xf32>
    %67 = vector.broadcast %66 : vector<1x128xf32> to vector<16x128xf32>
    %68 = arith.addf %65, %67 : vector<16x128xf32>
    %c0_30 = arith.constant 0 : index
    %c0_31 = arith.constant 0 : index
    %69 = vector.load %arg10[%c0_30, %c0_31] : memref<16x128xf32, #tpu.memory_space<vmem>>, vector<16x128xf32>
    tpu.vector_store %arg10[%c0_30, %c0_31], %68 {strides = array<i32>} : memref<16x128xf32, #tpu.memory_space<vmem>>, vector<16x128xf32>,
    return
  }
  func.func @transform_0(%arg0: i32) -> (i32, i32) {
    %c0_i32 = arith.constant 0 : i32
    %c0_i32_0 = arith.constant 0 : i32
    return %arg0, %c0_i32 : i32, i32
  }
  func.func @transform_1(%arg0: i32) -> (i32, i32) {
    %c0_i32 = arith.constant 0 : i32
    %c0_i32_0 = arith.constant 0 : i32
    %c0_i32_1 = arith.constant 0 : i32
    return %c0_i32, %c0_i32_0 : i32, i32
  }
  func.func @transform_2(%arg0: i32) -> (i32, i32) {
    %c0_i32 = arith.constant 0 : i32
    %c0_i32_0 = arith.constant 0 : i32
    %c0_i32_1 = arith.constant 0 : i32
    return %c0_i32, %c0_i32_0 : i32, i32
  }
  func.func @transform_3(%arg0: i32) -> (i32, i32) {
    %c0_i32 = arith.constant 0 : i32
    %c0_i32_0 = arith.constant 0 : i32
    %c0_i32_1 = arith.constant 0 : i32
    return %c0_i32, %c0_i32_0 : i32, i32
  }
  func.func @transform_4(%arg0: i32) -> (i32, i32) {
    %c0_i32 = arith.constant 0 : i32
    %c0_i32_0 = arith.constant 0 : i32
    %c0_i32_1 = arith.constant 0 : i32
    return %c0_i32, %c0_i32_0 : i32, i32
  }
  func.func @transform_5(%arg0: i32) -> (i32, i32) {
    %c0_i32 = arith.constant 0 : i32
    %c0_i32_0 = arith.constant 0 : i32
    %c0_i32_1 = arith.constant 0 : i32
    return %c0_i32, %c0_i32_0 : i32, i32
  }
  func.func @transform_6(%arg0: i32) -> (i32, i32) {
    %c0_i32 = arith.constant 0 : i32
    %c0_i32_0 = arith.constant 0 : i32
    %c0_i32_1 = arith.constant 0 : i32
    return %c0_i32, %c0_i32_0 : i32, i32
  }
  func.func @transform_7(%arg0: i32) -> (i32, i32) {
    %c0_i32 = arith.constant 0 : i32
    %c0_i32_0 = arith.constant 0 : i32
    %c0_i32_1 = arith.constant 0 : i32
    return %c0_i32, %c0_i32_0 : i32, i32
  }
  func.func @transform_8(%arg0: i32) -> (i32, i32) {
    %c0_i32 = arith.constant 0 : i32
    %c0_i32_0 = arith.constant 0 : i32
    %c0_i32_1 = arith.constant 0 : i32
    return %c0_i32, %c0_i32_0 : i32, i32
  }
  func.func @transform_9(%arg0: i32) -> (i32, i32) {
    %c0_i32 = arith.constant 0 : i32
    %c0_i32_0 = arith.constant 0 : i32
    return %arg0, %c0_i32 : i32, i32
  }
}

</mosaic_0001>

<bundles_post_ra>
// kernel: _lambda_.1
= control target key start
LH: loop header
LB: loop body
LE: loop exit
PB: predicated region body
PF: predicated region fallthrough
CT: control target
= control target key end

     0   :  { %14 = vsyncpa [#allocation3], 0  ;;  %s475_s12 = smov [#allocation2]   ;;  %s476_s14 = smov 64   ;;  %s589_s0 = inlined_call_operand.vmem [shape: bf16[16,128], index: 0, kind: input, shape index: {}]   ;;  %s590_s1 = inlined_call_operand.hbm [shape: bf16[128,128], index: 1, kind: input, shape index: {}]   ;;  %s591_s2 = inlined_call_operand.vmem [shape: f32[1,128], index: 2, kind: input, shape index: {}]   ;;  %s592_s3 = inlined_call_operand.vmem [shape: f32[1,128], index: 3, kind: input, shape index: {}, may-alias: {3,7}]   ;;  %s593_s4 = inlined_call_operand.vmem [shape: f32[1,128], index: 4, kind: input, shape index: {}, may-alias: {4,8}]   ;;  %s594_s5 = inlined_call_operand.vmem [shape: bf16[128,128], index: 5, kind: input, shape index: {}]   ;;  %s595_s6 = inlined_call_operand.vmem [shape: f32[1,128], index: 6, kind: input, shape index: {}]   ;;  %s596_s7 = inlined_call_operand.vmem [shape: f32[1,128], index: 7, kind: input, shape index: {}, may-alias: {3,7}]   ;;  %s597_s8 = inlined_call_operand.vmem [shape: f32[1,128], index: 8, kind: input, shape index: {}, may-alias: {4,8}]   ;;  %s598_s9 = inlined_call_operand.vmem [shape: f32[16,128], index: 9, kind: output, shape index: {}]  }
   0x1   :  { %s21_s11 = sshll.u32 %s590_s1, 4  ;;  %s23_s13 = sshll.u32 %s475_s12, 4  ;;  %s22_s11 = int_to_ptr.hbm [resolvable:$true] %s21_s11  ;;  %s24_s13 = int_to_ptr.vmem [resolvable:$true] %s23_s13 }
   0x2   :  { %s477_s15 = smov 4  }
   0x3   :  { %29 = dma.hbm_to_vmem [thread:$0]  %s22_s11, 1024, %s24_s13, [#allocation3], %s476_s14, %s476_s14, %s477_s15  }
   0x4   :  { %473 = dma.done.wait [#allocation3], 1024  }
   0x5   :  { %474 = vsyncadd [#allocation3], 4294966272  ;;  %v422_v0 = vld [vmem:[#allocation2 + $0x38] sm:$0xff]  ;;  %v421_v1 = vld [vmem:[#allocation2 + $0x30] sm:$0xff]  ;;  %v48_v16 = vlaneseq  ;;  %v478_v20 = vmov 0.0  }
   0x6   :  { %129 = vmatpush.bf16.msra.mxu0 %v422_v0  ;;  %v420_v2 = vld [vmem:[#allocation2 + $0x28] sm:$0xff]  ;;  %v419_v3 = vld [vmem:[#allocation2 + $0x20] sm:$0xff]  ;;  %v418_v4 = vld [vmem:[#allocation2 + $0x18] sm:$0xff] }
   0x7   :  { %v417_v5 = vld [vmem:[#allocation2 + $0x10] sm:$0xff]  ;;  %v416_v6 = vld [vmem:[#allocation2 + $0x8] sm:$0xff]  ;;  %v415_v7 = vld [vmem:[#allocation2] sm:$0xff]  ;;  %v49_v17 = vand.u32 127, %v48_v16 }
   0x8   :  { %v414_v8 = vld [vmem:[%s589_s0] sm:$0xff]  ;;  %v430_v30 = vld [vmem:[%s594_s5 + $0x38] sm:$0xff]  ;;  %v429_v31 = vld [vmem:[%s594_s5 + $0x30] sm:$0xff] }
   0x9   :  { %v435_v9 = vld [vmem:[%s591_s2] ss:$0 sm:$0xff]  ;;  %vm50_vm0 = vcmp.lt.s32.totalorder %v49_v17, 32  ;;  %268 = vmatpush.bf16.msra.mxu1 %v430_v30  ;;  %v428_v32 = vld [vmem:[%s594_s5 + $0x28] sm:$0xff]  ;;  %v426_v34 = vld [vmem:[%s594_s5 + $0x18] sm:$0xff] }
   0xa   :  { %130 = vmatpush.bf16.msra.mxu0 %v421_v1  ;;  %v538_v21 = vsel %vm50_vm0, 1.0, %v478_v20  ;;  %v427_v33 = vld [vmem:[%s594_s5 + $0x20] sm:$0xff]  ;;  %v425_v35 = vld [vmem:[%s594_s5 + $0x10] sm:$0xff]  ;;  %v424_v36 = vld [vmem:[%s594_s5 + $0x8] sm:$0xff] }
   0xb   :  { %v423_v38 = vld [vmem:[%s594_s5] sm:$0xff] }
   0xc   :  { %v436_v57 = vld [vmem:[%s592_s3] ss:$0 sm:$0xff] }
   0xd   :  { %269 = vmatpush.bf16.msra.mxu1 %v429_v31  ;;  %v437_v62 = vld [vmem:[%s593_s4] ss:$0 sm:$0xff] }
   0xe   :  { %131 = vmatpush.bf16.msra.mxu0 %v420_v2 }
  0x11   :  { %270 = vmatpush.bf16.msra.mxu1 %v428_v32 }
  0x12   :  { %132 = vmatpush.bf16.msra.mxu0 %v419_v3  ;;  %v438_v3 = vld [vmem:[%s595_s6] ss:$0 sm:$0xff] }
  0x15   :  { %271 = vmatpush.bf16.msra.mxu1 %v427_v33 }
  0x16   :  { %133 = vmatpush.bf16.msra.mxu0 %v418_v4 }
  0x19   :  { %272 = vmatpush.bf16.msra.mxu1 %v426_v34  ;;  %v439_v34 = vld [vmem:[%s596_s7] ss:$0 sm:$0xff] }
  0x1a   :  { %134 = vmatpush.bf16.msra.mxu0 %v417_v5 }
  0x1d   :  { %273 = vmatpush.bf16.msra.mxu1 %v425_v35 }
  0x1e   :  { %135 = vmatpush.bf16.msra.mxu0 %v416_v6 }
  0x21   :  { %274 = vmatpush.bf16.msra.mxu1 %v424_v36 }
  0x22   :  { %136 = vmatpush.bf16.msra.mxu0 %v415_v7 }
  0x25   :  { %137 = vmatmul.bf16.vlgmr.msra.gmra.mxu0 %v414_v8  ;;  %275 = vmatpush.bf16.msra.mxu1 %v423_v38 }
  0xa2   :  { %v138_v10 = vpop.f32.mrf.mxu0 }
  0xa3   :  { %v139_v11 = vadd.f32 %v435_v9, %v138_v10 }
  0xa5   :  { %v143_v12 = vmax.f32 %v139_v11, 0.0 }
  0xa7   :  { %145 = vadd.xlane.f32.xlu0 %v143_v12 }
  0xaa   :  { %v140_v13 = vpop.f32.mrf.mxu0 }
  0xab   :  { %v141_v14 = vadd.f32 %v435_v9, %v140_v13 }
  0xad   :  { %v144_v15 = vmax.f32 %v141_v14, 0.0 }
  0xaf   :  { %147 = vadd.xlane.f32.xlu0 %v144_v15 }
 0x11a   :  { %v146_v18 = vpop.xlane.xlu0 %145 }
 0x11b   :  { %v149_v19 = vmul.f32 0.03125, %v146_v18 }
 0x11d   :  { %v151_v22 = vsub.f32 %v143_v12, %v149_v19 }
 0x11f   :  { %v153_v23 = vmul.f32 %v538_v21, %v151_v22 }
 0x121   :  { %v155_v24 = vmul.f32 %v153_v23, %v153_v23 }
 0x122   :  { %v148_v25 = vpop.xlane.xlu0 %147 }
 0x123   :  { %v150_v26 = vmul.f32 0.03125, %v148_v25  ;;  %157 = vadd.xlane.f32.xlu1 %v155_v24 }
 0x125   :  { %v152_v27 = vsub.f32 %v144_v15, %v150_v26 }
 0x127   :  { %v154_v28 = vmul.f32 %v538_v21, %v152_v27 }
 0x129   :  { %v156_v29 = vmul.f32 %v154_v28, %v154_v28 }
 0x12b   :  { %159 = vadd.xlane.f32.xlu1 %v156_v29 }
 0x196   :  { %v158_v37 = vpop.xlane.xlu1 %157 }
 0x197   :  { %v161_v39 = vmul.f32 0.03125, %v158_v37  ;;  %v440_v37 = vld [vmem:[%s597_s8] ss:$0 sm:$0xff] }
 0x199   :  { %v163_v40 = vadd.f32 1e-05, %v161_v39 }
 0x19b   :  { %441 = vrsqrt.f32 %v163_v40  ;;  %vm171_vm2 = vweird.f32 %v163_v40 }
 0x19e   :  { %v160_v41 = vpop.xlane.xlu1 %159 }
 0x19f   :  { %v162_v42 = vmul.f32 0.03125, %v160_v41 }
 0x1a1   :  { %v442_v43 = vpop.eup %441  ;;  %v164_v44 = vadd.f32 1e-05, %v162_v42 }
 0x1a2   :  { %v166_v45 = vmul.f32 %v442_v43, %v163_v40  ;;  %vm172_vm1 = vweird.f32 %v442_v43 }
 0x1a3   :  { %443 = vrsqrt.f32 %v164_v44  ;;  %vm173_vm3 = vmor %vm171_vm2, %vm172_vm1  ;;  %vm181_vm5 = vweird.f32 %v164_v44 }
 0x1a4   :  { %v167_v46 = vmul.f32 %v442_v43, %v166_v45 }
 0x1a6   :  { %v168_v47 = vmul.f32 0.5, %v167_v46 }
 0x1a8   :  { %v169_v48 = vsub.f32 1.5, %v168_v47 }
 0x1a9   :  { %v444_v49 = vpop.eup %443 }
 0x1aa   :  { %v170_v50 = vmul.f32 %v442_v43, %v169_v48  ;;  %v176_v51 = vmul.f32 %v444_v49, %v164_v44  ;;  %vm182_vm4 = vweird.f32 %v444_v49 }
 0x1ab   :  { %vm183_vm6 = vmor %vm181_vm5, %vm182_vm4 }
 0x1ac   :  { %v177_v52 = vmul.f32 %v444_v49, %v176_v51  ;;  %v174_v54 = vsel %vm173_vm3, %v442_v43, %v170_v50 }
 0x1ad   :  { %v185_v56 = vmul.f32 %v174_v54, %v153_v23 }
 0x1ae   :  { %v178_v53 = vmul.f32 0.5, %v177_v52 }
 0x1af   :  { %v191_v61 = vmul.f32 %v436_v57, %v185_v56 }
 0x1b0   :  { %v179_v55 = vsub.f32 1.5, %v178_v53 }
 0x1b1   :  { %v197_v0 = vadd.f32 %v437_v62, %v191_v61 }
 0x1b2   :  { %v180_v58 = vmul.f32 %v444_v49, %v179_v55 }
 0x1b4   :  { %v184_v59 = vsel %vm183_vm6, %v444_v49, %v180_v58 }
 0x1b5   :  { %v186_v60 = vmul.f32 %v184_v59, %v154_v28 }
 0x1b7   :  { %v192_v63 = vmul.f32 %v436_v57, %v186_v60 }
 0x1b9   :  { %v198_v1 = vadd.f32 %v437_v62, %v192_v63 }
 0x1bb   :  { %v199_v2 = vpack.c.bf16 %v198_v1, %v197_v0 }
 0x1bd   :  { %276 = vmatmul.bf16.vlgmr.msra.gmra.mxu1 %v199_v2 }
 0x23a   :  { %v277_v4 = vpop.f32.mrf.mxu1 }
 0x23b   :  { %v278_v5 = vadd.f32 %v438_v3, %v277_v4 }
 0x23d   :  { %v282_v6 = vmax.f32 %v278_v5, 0.0 }
 0x23f   :  { %284 = vadd.xlane.f32.xlu2 %v282_v6 }
 0x242   :  { %v279_v7 = vpop.f32.mrf.mxu1 }
 0x243   :  { %v280_v8 = vadd.f32 %v438_v3, %v279_v7 }
 0x245   :  { %v283_v9 = vmax.f32 %v280_v8, 0.0 }
 0x247   :  { %286 = vadd.xlane.f32.xlu2 %v283_v9 }
 0x2b2   :  { %v285_v10 = vpop.xlane.xlu2 %284 }
 0x2b3   :  { %v288_v11 = vmul.f32 0.03125, %v285_v10 }
 0x2b5   :  { %v290_v12 = vsub.f32 %v282_v6, %v288_v11 }
 0x2b7   :  { %v292_v13 = vmul.f32 %v538_v21, %v290_v12 }
 0x2b9   :  { %v294_v14 = vmul.f32 %v292_v13, %v292_v13 }
 0x2ba   :  { %v287_v15 = vpop.xlane.xlu2 %286 }
 0x2bb   :  { %v289_v16 = vmul.f32 0.03125, %v287_v15  ;;  %296 = vadd.xlane.f32.xlu0 %v294_v14 }
 0x2bd   :  { %v291_v17 = vsub.f32 %v283_v9, %v289_v16 }
 0x2bf   :  { %v293_v18 = vmul.f32 %v538_v21, %v291_v17 }
 0x2c1   :  { %v295_v19 = vmul.f32 %v293_v18, %v293_v18 }
 0x2c3   :  { %298 = vadd.xlane.f32.xlu1 %v295_v19 }
 0x32e   :  { %v297_v20 = vpop.xlane.xlu0 %296 }
 0x32f   :  { %v300_v22 = vmul.f32 0.03125, %v297_v20 }
 0x331   :  { %v302_v23 = vadd.f32 1e-05, %v300_v22 }
 0x333   :  { %445 = vrsqrt.f32 %v302_v23  ;;  %vm310_vm8 = vweird.f32 %v302_v23 }
 0x336   :  { %v299_v24 = vpop.xlane.xlu1 %298 }
 0x337   :  { %v301_v25 = vmul.f32 0.03125, %v299_v24 }
 0x339   :  { %v446_v26 = vpop.eup %445  ;;  %v303_v27 = vadd.f32 1e-05, %v301_v25 }
 0x33a   :  { %v305_v28 = vmul.f32 %v446_v26, %v302_v23  ;;  %vm311_vm7 = vweird.f32 %v446_v26 }
 0x33b   :  { %447 = vrsqrt.f32 %v303_v27  ;;  %vm312_vm9 = vmor %vm310_vm8, %vm311_vm7  ;;  %vm320_vm11 = vweird.f32 %v303_v27 }
 0x33c   :  { %v306_v29 = vmul.f32 %v446_v26, %v305_v28 }
 0x33e   :  { %v307_v30 = vmul.f32 0.5, %v306_v29 }
 0x340   :  { %v308_v31 = vsub.f32 1.5, %v307_v30 }
 0x341   :  { %v448_v32 = vpop.eup %447 }
 0x342   :  { %v309_v33 = vmul.f32 %v446_v26, %v308_v31  ;;  %v315_v21 = vmul.f32 %v448_v32, %v303_v27  ;;  %vm321_vm10 = vweird.f32 %v448_v32 }
 0x343   :  { %vm322_vm12 = vmor %vm320_vm11, %vm321_vm10 }
 0x344   :  { %v313_v35 = vsel %vm312_vm9, %v446_v26, %v309_v33  ;;  %v316_v36 = vmul.f32 %v448_v32, %v315_v21 }
 0x345   :  { %v324_v38 = vmul.f32 %v313_v35, %v292_v13 }
 0x346   :  { %v317_v39 = vmul.f32 0.5, %v316_v36 }
 0x347   :  { %v330_v40 = vmul.f32 %v439_v34, %v324_v38 }
 0x348   :  { %v318_v41 = vsub.f32 1.5, %v317_v39 }
 0x349   :  { %v336_v42 = vadd.f32 %v440_v37, %v330_v40 }
 0x34a   :  { %v319_v43 = vmul.f32 %v448_v32, %v318_v41 }
 0x34b   :  { %338 = vst [vmem:[%s598_s9] sm:$0xff] %v336_v42 }
 0x34c   :  { %v323_v44 = vsel %vm322_vm12, %v448_v32, %v319_v43 }
 0x34d   :  { %v325_v45 = vmul.f32 %v323_v44, %v293_v18 }
 0x34f   :  { %v331_v46 = vmul.f32 %v439_v34, %v325_v45 }
 0x351   :  { %v337_v47 = vadd.f32 %v440_v37, %v331_v46 }
 0x353   :  { %339 = vst [vmem:[%s598_s9 + $0x8] sm:$0xff] %v337_v47 }
 0x354   :  { %344 = vsyncpa [#allocation3], 1 }

</bundles_post_ra>
